<compile_context>
chip_gen: v7x
topology: tpu7x:2x2x1
jax: 0.10.0
libtpu: 0.0.40
codegen_flags: <defaults>
</compile_context>

<pallas_src>
import jax
import jax.numpy as jnp
from jax.experimental import pallas as pl
from jax.experimental.pallas import tpu as pltpu


def _round_up(x, m):
    return ((x + m - 1) // m) * m


# ----------------------------------------------------------------------------
# Kernel
# ----------------------------------------------------------------------------
def _vae_linear_kernel(x_ref, w_ref, b_ref, eps_ref, z_ref, mu_ref, lv_ref):
    n_pad = mu_ref.shape[-1]

    # bf16 operands on the MXU, f32 accumulation.  Single fused matmul against
    # the packed [w_mu | w_logvar] weight -> (tm, 2*n_pad) f32.
    x = x_ref[...].astype(jnp.bfloat16)
    s = jnp.dot(x, w_ref[...], preferred_element_type=jnp.float32)
    s = s + b_ref[...]                      # (1, 2*n_pad) f32 bias, row-broadcast

    # Split mu / logvar at a 128-aligned lane boundary (cheap static slices).
    mu = s[:, :n_pad]
    logvar = s[:, n_pad:]

    # Reparameterize: z = mu + exp(0.5 * logvar) * eps   (exp runs on the EUP).
    std = jnp.exp(0.5 * logvar)
    z = mu + std * eps_ref[...]

    # Lane-dense (128-multiple) unmasked stores.
    z_ref[...] = z.astype(z_ref.dtype)
    mu_ref[...] = mu.astype(mu_ref.dtype)
    lv_ref[...] = logvar.astype(lv_ref.dtype)


# ----------------------------------------------------------------------------
# One-time parameter preparation (hoisted out of the forward path)
# ----------------------------------------------------------------------------
def prepare_vae_linear_params(w, b, *, param_dtype=jnp.bfloat16):
    """w: (C_in, 2N) with the mu half in the first N columns, b: (2N,)."""
    c_in, two_n = w.shape
    assert two_n % 2 == 0 and b.shape == (two_n,), (
        "expected w of shape (C_in, 2N) (torch (2N, C_in) weight transposed, "
        "mu columns first) and b of shape (2N,)")
    n = two_n // 2
    n_pad = _round_up(max(n, 128), 128)

    w_mu = jnp.zeros((c_in, n_pad), param_dtype).at[:, :n].set(w[:, :n].astype(param_dtype))
    w_lv = jnp.zeros((c_in, n_pad), param_dtype).at[:, :n].set(w[:, n:].astype(param_dtype))
    w_packed = jnp.concatenate([w_mu, w_lv], axis=1)              # (C_in, 2*n_pad) bf16

    b_mu = jnp.zeros((1, n_pad), jnp.float32).at[0, :n].set(b[:n].astype(jnp.float32))
    b_lv = jnp.zeros((1, n_pad), jnp.float32).at[0, :n].set(b[n:].astype(jnp.float32))
    b_packed = jnp.concatenate([b_mu, b_lv], axis=1)               # (1, 2*n_pad) f32

    return {"w_packed": w_packed, "b_packed": b_packed,
            "c_in": c_in, "n": n, "n_pad": n_pad}


def _pick_tm(batch, max_tm):
    max_tm = max(8, (max_tm // 8) * 8)
    if batch % 8 == 0:
        if batch >= 16:
            # Aim for >=2 grid tiles so ("parallel",) can shard the batch axis
            # across v7x's two TensorCores; bounded by max_tm for VMEM.
            return min(max_tm, _round_up((batch + 1) // 2, 8))
        return batch
    # Batch not a multiple of 8: either one full-extent block, or 8-aligned
    # tiles with a Pallas-masked partial last block.
    return batch if batch <= max_tm else max_tm


# ----------------------------------------------------------------------------
# Forward wrapper
# ----------------------------------------------------------------------------
def vae_linear_forward(x, params, eps, *, max_tm=512, out_dtype=jnp.float32,
                       single_buffer_weights=True, output_ori=True):
    """x: (B, C_in), eps: (B, N) -> (z, mu, logvar) (or just z if not output_ori)."""
    B, c_in = x.shape
    n, n_pad = params["n"], params["n_pad"]
    w_packed, b_packed = params["w_packed"], params["b_packed"]
    assert c_in == params["c_in"], "x feature dim does not match prepared params"
    assert eps.shape == (B, n), "eps must have shape (B, N)"

    tm = _pick_tm(B, max_tm)
    grid = (pl.cdiv(B, tm),)

    # Lane-only pad of eps to n_pad (no batch padding, no x copy).
    eps_p = eps.astype(jnp.float32)
    if n_pad != n:
        eps_p = jnp.pad(eps_p, ((0, 0), (0, n_pad - n)))

    def build(single_buf):
        const_kw = dict(pipeline_mode=pl.Buffered(1)) if single_buf else {}
        x_spec = pl.BlockSpec((tm, c_in), lambda i: (i, 0))
        w_spec = pl.BlockSpec((c_in, 2 * n_pad), lambda i: (0, 0), **const_kw)
        b_spec = pl.BlockSpec((1, 2 * n_pad), lambda i: (0, 0), **const_kw)
        row_spec = pl.BlockSpec((tm, n_pad), lambda i: (i, 0))
        return pl.pallas_call(
            _vae_linear_kernel,
            out_shape=tuple(jax.ShapeDtypeStruct((B, n_pad), out_dtype) for _ in range(3)),
            grid=grid,
            in_specs=[x_spec, w_spec, b_spec, row_spec],
            out_specs=(row_spec, row_spec, row_spec),
            compiler_params=pltpu.CompilerParams(
                dimension_semantics=("parallel",),
                vmem_limit_bytes=48 * 1024 * 1024,   # fits v7x's 64 MiB; ample on v5e/v6e
            ),
        )

    try:
        z_p, mu_p, lv_p = build(single_buffer_weights)(x, w_packed, b_packed, eps_p)
    except Exception:
        if not single_buffer_weights:
            raise
        # Fallback: default (double-buffered) weight specs.
        z_p, mu_p, lv_p = build(False)(x, w_packed, b_packed, eps_p)

    # Strip lane padding (wrapper-side slice restores the original N).
    z, mu, logvar = z_p[:, :n], mu_p[:, :n], lv_p[:, :n]
    if output_ori:
        return z, mu, logvar
    return z


# ----------------------------------------------------------------------------
# Self-test
# ----------------------------------------------------------------------------
if __name__ == "__main__":
    B = 8
    in_channels = 32
    out_channels = 16

    key = jax.random.PRNGKey(0)
    k_x, k_w, k_b, k_eps = jax.random.split(key, 4)

    # Deterministic parameter init (mimics nn.Linear's uniform(-1/sqrt(fan_in), +)).
    bound = 1.0 / (in_channels ** 0.5)
    x = jax.random.normal(k_x, (B, in_channels), dtype=jnp.float32)
    w = jax.random.uniform(k_w, (in_channels, 2 * out_channels),
                           minval=-bound, maxval=bound, dtype=jnp.float32)
    b = jax.random.uniform(k_b, (2 * out_channels,),
                           minval=-bound, maxval=bound, dtype=jnp.float32)
    eps = jax.random.normal(k_eps, (B, out_channels), dtype=jnp.float32)

    # One-time layout/cast of the parameters (hoisted out of the forward path).
    params = prepare_vae_linear_params(w, b)

    z, mu, logvar = vae_linear_forward(x, params, eps)
    jax.block_until_ready((z, mu, logvar))

    # Pure-JAX reference using the same bf16 matmul operands / f32 accumulation.
    x_bf = x.astype(jnp.bfloat16).astype(jnp.float32)
    w_bf = w.astype(jnp.bfloat16).astype(jnp.float32)
    ml_ref = x_bf @ w_bf + b
    mu_ref, lv_ref = ml_ref[:, :out_channels], ml_ref[:, out_channels:]
    z_ref = mu_ref + jnp.exp(0.5 * lv_ref) * eps

    assert jnp.allclose(mu, mu_ref, atol=2e-3), float(jnp.max(jnp.abs(mu - mu_ref)))
    assert jnp.allclose(logvar, lv_ref, atol=2e-3), float(jnp.max(jnp.abs(logvar - lv_ref)))
    assert jnp.allclose(z, z_ref, atol=3e-3), float(jnp.max(jnp.abs(z - z_ref)))

    print("KERNEL_OK")
</pallas_src>

<mosaic_0001>
module attributes {stable_mosaic.version = 11 : i64} {
  func.func @_vae_linear_kernel(%arg0: i32, %arg1: memref<8x32xf32, #tpu.memory_space<vmem>>, %arg2: memref<32x256xbf16, #tpu.memory_space<vmem>>, %arg3: memref<1x256xf32, #tpu.memory_space<vmem>>, %arg4: memref<8x128xf32, #tpu.memory_space<vmem>>, %arg5: memref<8x128xf32, #tpu.memory_space<vmem>>, %arg6: memref<8x128xf32, #tpu.memory_space<vmem>>, %arg7: memref<8x128xf32, #tpu.memory_space<vmem>>) attributes {dimension_semantics = [#tpu.dimension_semantics<parallel>], iteration_bounds = array<i64: 1>, scalar_prefetch = 0 : i64, scratch_operands = 0 : i64, tpu.core_type = #tpu.core_type<tc>, window_params = [{transform_indices = @transform_0, window_bounds = array<i64: 8, 32>}, {pipeline_mode = #tpu.pipeline_mode<synchronous>, transform_indices = @transform_1, window_bounds = array<i64: 32, 256>}, {pipeline_mode = #tpu.pipeline_mode<synchronous>, transform_indices = @transform_2, window_bounds = array<i64: 1, 256>}, {transform_indices = @transform_3, window_bounds = array<i64: 8, 128>}, {transform_indices = @transform_4, window_bounds = array<i64: 8, 128>}, {transform_indices = @transform_5, window_bounds = array<i64: 8, 128>}, {transform_indices = @transform_6, window_bounds = array<i64: 8, 128>}]} {
    %c0 = arith.constant 0 : index
    %c0_0 = arith.constant 0 : index
    %0 = vector.load %arg1[%c0, %c0_0] : memref<8x32xf32, #tpu.memory_space<vmem>>, vector<8x32xf32>
    %1 = arith.truncf %0 : vector<8x32xf32> to vector<8x32xbf16>
    %c0_1 = arith.constant 0 : index
    %c0_2 = arith.constant 0 : index
    %2 = vector.load %arg2[%c0_1, %c0_2] : memref<32x256xbf16, #tpu.memory_space<vmem>>, vector<32x256xbf16>
    %cst = arith.constant dense<0.000000e+00> : vector<8x256xf32>
    %3 = tpu.matmul %1, %2, %cst {dimension_numbers = #tpu.dot_dimension_numbers<[1], [0], [0], [1], [0, 0, 1, 1], [], []>} : vector<8x32xbf16>, vector<32x256xbf16>, vector<8x256xf32> -> vector<8x256xf32>
    %c0_3 = arith.constant 0 : index
    %c0_4 = arith.constant 0 : index
    %4 = vector.load %arg3[%c0_3, %c0_4] : memref<1x256xf32, #tpu.memory_space<vmem>>, vector<1x256xf32>
    %5 = vector.broadcast %4 : vector<1x256xf32> to vector<8x256xf32>
    %6 = arith.addf %3, %5 : vector<8x256xf32>
    %7 = vector.extract_strided_slice %6 {offsets = [0, 0], sizes = [8, 128], strides = [1, 1]} : vector<8x256xf32> to vector<8x128xf32>
    %8 = vector.extract_strided_slice %6 {offsets = [0, 128], sizes = [8, 128], strides = [1, 1]} : vector<8x256xf32> to vector<8x128xf32>
    %cst_5 = arith.constant 5.000000e-01 : f32
    %9 = vector.broadcast %cst_5 : f32 to vector<8x128xf32>
    %10 = arith.mulf %9, %8 : vector<8x128xf32>
    %11 = math.exp %10 : vector<8x128xf32>
    %c0_6 = arith.constant 0 : index
    %c0_7 = arith.constant 0 : index
    %12 = vector.load %arg4[%c0_6, %c0_7] : memref<8x128xf32, #tpu.memory_space<vmem>>, vector<8x128xf32>
    %13 = arith.mulf %11, %12 : vector<8x128xf32>
    %14 = arith.addf %7, %13 : vector<8x128xf32>
    %c0_8 = arith.constant 0 : index
    %c0_9 = arith.constant 0 : index
    %15 = vector.load %arg5[%c0_8, %c0_9] : memref<8x128xf32, #tpu.memory_space<vmem>>, vector<8x128xf32>
    tpu.vector_store %arg5[%c0_8, %c0_9], %14 {strides = array<i32>} : memref<8x128xf32, #tpu.memory_space<vmem>>, vector<8x128xf32>,
    %c0_10 = arith.constant 0 : index
    %c0_11 = arith.constant 0 : index
    %16 = vector.load %arg6[%c0_10, %c0_11] : memref<8x128xf32, #tpu.memory_space<vmem>>, vector<8x128xf32>
    tpu.vector_store %arg6[%c0_10, %c0_11], %7 {strides = array<i32>} : memref<8x128xf32, #tpu.memory_space<vmem>>, vector<8x128xf32>,
    %c0_12 = arith.constant 0 : index
    %c0_13 = arith.constant 0 : index
    %17 = vector.load %arg7[%c0_12, %c0_13] : memref<8x128xf32, #tpu.memory_space<vmem>>, vector<8x128xf32>
    tpu.vector_store %arg7[%c0_12, %c0_13], %8 {strides = array<i32>} : memref<8x128xf32, #tpu.memory_space<vmem>>, vector<8x128xf32>,
    return
  }
  func.func @transform_0(%arg0: i32) -> (i32, i32) {
    %c0_i32 = arith.constant 0 : i32
    %c0_i32_0 = arith.constant 0 : i32
    return %arg0, %c0_i32 : i32, i32
  }
  func.func @transform_1(%arg0: i32) -> (i32, i32) {
    %c0_i32 = arith.constant 0 : i32
    %c0_i32_0 = arith.constant 0 : i32
    %c0_i32_1 = arith.constant 0 : i32
    return %c0_i32, %c0_i32_0 : i32, i32
  }
  func.func @transform_2(%arg0: i32) -> (i32, i32) {
    %c0_i32 = arith.constant 0 : i32
    %c0_i32_0 = arith.constant 0 : i32
    %c0_i32_1 = arith.constant 0 : i32
    return %c0_i32, %c0_i32_0 : i32, i32
  }
  func.func @transform_3(%arg0: i32) -> (i32, i32) {
    %c0_i32 = arith.constant 0 : i32
    %c0_i32_0 = arith.constant 0 : i32
    return %arg0, %c0_i32 : i32, i32
  }
  func.func @transform_4(%arg0: i32) -> (i32, i32) {
    %c0_i32 = arith.constant 0 : i32
    %c0_i32_0 = arith.constant 0 : i32
    return %arg0, %c0_i32 : i32, i32
  }
  func.func @transform_5(%arg0: i32) -> (i32, i32) {
    %c0_i32 = arith.constant 0 : i32
    %c0_i32_0 = arith.constant 0 : i32
    return %arg0, %c0_i32 : i32, i32
  }
  func.func @transform_6(%arg0: i32) -> (i32, i32) {
    %c0_i32 = arith.constant 0 : i32
    %c0_i32_0 = arith.constant 0 : i32
    return %arg0, %c0_i32 : i32, i32
  }
}

module attributes {stable_mosaic.version = 11 : i64} {
  func.func @_vae_linear_kernel(%arg0: i32, %arg1: memref<8x32xf32, #tpu.memory_space<vmem>>, %arg2: memref<32x256xbf16, #tpu.memory_space<vmem>>, %arg3: memref<1x256xf32, #tpu.memory_space<vmem>>, %arg4: memref<8x128xf32, #tpu.memory_space<vmem>>, %arg5: memref<8x128xf32, #tpu.memory_space<vmem>>, %arg6: memref<8x128xf32, #tpu.memory_space<vmem>>, %arg7: memref<8x128xf32, #tpu.memory_space<vmem>>) attributes {dimension_semantics = [#tpu.dimension_semantics<parallel>], iteration_bounds = array<i64: 1>, scalar_prefetch = 0 : i64, scratch_operands = 0 : i64, tpu.core_type = #tpu.core_type<tc>, window_params = [{transform_indices = @transform_0, window_bounds = array<i64: 8, 32>}, {pipeline_mode = #tpu.pipeline_mode<synchronous>, transform_indices = @transform_1, window_bounds = array<i64: 32, 256>}, {pipeline_mode = #tpu.pipeline_mode<synchronous>, transform_indices = @transform_2, window_bounds = array<i64: 1, 256>}, {transform_indices = @transform_3, window_bounds = array<i64: 8, 128>}, {transform_indices = @transform_4, window_bounds = array<i64: 8, 128>}, {transform_indices = @transform_5, window_bounds = array<i64: 8, 128>}, {transform_indices = @transform_6, window_bounds = array<i64: 8, 128>}]} {
    %c0 = arith.constant 0 : index
    %c0_0 = arith.constant 0 : index
    %0 = vector.load %arg1[%c0, %c0_0] : memref<8x32xf32, #tpu.memory_space<vmem>>, vector<8x32xf32>
    %1 = arith.truncf %0 : vector<8x32xf32> to vector<8x32xbf16>
    %c0_1 = arith.constant 0 : index
    %c0_2 = arith.constant 0 : index
    %2 = vector.load %arg2[%c0_1, %c0_2] : memref<32x256xbf16, #tpu.memory_space<vmem>>, vector<32x256xbf16>
    %cst = arith.constant dense<0.000000e+00> : vector<8x256xf32>
    %3 = tpu.matmul %1, %2, %cst {dimension_numbers = #tpu.dot_dimension_numbers<[1], [0], [0], [1], [0, 0, 1, 1], [], []>} : vector<8x32xbf16>, vector<32x256xbf16>, vector<8x256xf32> -> vector<8x256xf32>
    %c0_3 = arith.constant 0 : index
    %c0_4 = arith.constant 0 : index
    %4 = vector.load %arg3[%c0_3, %c0_4] : memref<1x256xf32, #tpu.memory_space<vmem>>, vector<1x256xf32>
    %5 = vector.broadcast %4 : vector<1x256xf32> to vector<8x256xf32>
    %6 = arith.addf %3, %5 : vector<8x256xf32>
    %7 = vector.extract_strided_slice %6 {offsets = [0, 0], sizes = [8, 128], strides = [1, 1]} : vector<8x256xf32> to vector<8x128xf32>
    %8 = vector.extract_strided_slice %6 {offsets = [0, 128], sizes = [8, 128], strides = [1, 1]} : vector<8x256xf32> to vector<8x128xf32>
    %cst_5 = arith.constant 5.000000e-01 : f32
    %9 = vector.broadcast %cst_5 : f32 to vector<8x128xf32>
    %10 = arith.mulf %9, %8 : vector<8x128xf32>
    %11 = math.exp %10 : vector<8x128xf32>
    %c0_6 = arith.constant 0 : index
    %c0_7 = arith.constant 0 : index
    %12 = vector.load %arg4[%c0_6, %c0_7] : memref<8x128xf32, #tpu.memory_space<vmem>>, vector<8x128xf32>
    %13 = arith.mulf %11, %12 : vector<8x128xf32>
    %14 = arith.addf %7, %13 : vector<8x128xf32>
    %c0_8 = arith.constant 0 : index
    %c0_9 = arith.constant 0 : index
    %15 = vector.load %arg5[%c0_8, %c0_9] : memref<8x128xf32, #tpu.memory_space<vmem>>, vector<8x128xf32>
    tpu.vector_store %arg5[%c0_8, %c0_9], %14 {strides = array<i32>} : memref<8x128xf32, #tpu.memory_space<vmem>>, vector<8x128xf32>,
    %c0_10 = arith.constant 0 : index
    %c0_11 = arith.constant 0 : index
    %16 = vector.load %arg6[%c0_10, %c0_11] : memref<8x128xf32, #tpu.memory_space<vmem>>, vector<8x128xf32>
    tpu.vector_store %arg6[%c0_10, %c0_11], %7 {strides = array<i32>} : memref<8x128xf32, #tpu.memory_space<vmem>>, vector<8x128xf32>,
    %c0_12 = arith.constant 0 : index
    %c0_13 = arith.constant 0 : index
    %17 = vector.load %arg7[%c0_12, %c0_13] : memref<8x128xf32, #tpu.memory_space<vmem>>, vector<8x128xf32>
    tpu.vector_store %arg7[%c0_12, %c0_13], %8 {strides = array<i32>} : memref<8x128xf32, #tpu.memory_space<vmem>>, vector<8x128xf32>,
    return
  }
  func.func @transform_0(%arg0: i32) -> (i32, i32) {
    %c0_i32 = arith.constant 0 : i32
    %c0_i32_0 = arith.constant 0 : i32
    return %arg0, %c0_i32 : i32, i32
  }
  func.func @transform_1(%arg0: i32) -> (i32, i32) {
    %c0_i32 = arith.constant 0 : i32
    %c0_i32_0 = arith.constant 0 : i32
    %c0_i32_1 = arith.constant 0 : i32
    return %c0_i32, %c0_i32_0 : i32, i32
  }
  func.func @transform_2(%arg0: i32) -> (i32, i32) {
    %c0_i32 = arith.constant 0 : i32
    %c0_i32_0 = arith.constant 0 : i32
    %c0_i32_1 = arith.constant 0 : i32
    return %c0_i32, %c0_i32_0 : i32, i32
  }
  func.func @transform_3(%arg0: i32) -> (i32, i32) {
    %c0_i32 = arith.constant 0 : i32
    %c0_i32_0 = arith.constant 0 : i32
    return %arg0, %c0_i32 : i32, i32
  }
  func.func @transform_4(%arg0: i32) -> (i32, i32) {
    %c0_i32 = arith.constant 0 : i32
    %c0_i32_0 = arith.constant 0 : i32
    return %arg0, %c0_i32 : i32, i32
  }
  func.func @transform_5(%arg0: i32) -> (i32, i32) {
    %c0_i32 = arith.constant 0 : i32
    %c0_i32_0 = arith.constant 0 : i32
    return %arg0, %c0_i32 : i32, i32
  }
  func.func @transform_6(%arg0: i32) -> (i32, i32) {
    %c0_i32 = arith.constant 0 : i32
    %c0_i32_0 = arith.constant 0 : i32
    return %arg0, %c0_i32 : i32, i32
  }
}

</mosaic_0001>

<bundles_post_ra>
// kernel: tpu_custom_call.1
= control target key start
LH: loop header
LB: loop body
LE: loop exit
PB: predicated region body
PF: predicated region fallthrough
CT: control target
= control target key end

     0   :  { %12 = vsyncpa [#allocation3], 0  ;;  %s446_s0 = inlined_call_operand.hbm [shape: f32[8,32], index: 0, kind: input, shape index: {}]   ;;  %s447_s1 = inlined_call_operand.hbm [shape: bf16[32,256], index: 1, kind: input, shape index: {}]   ;;  %s448_s2 = inlined_call_operand.vmem [shape: f32[1,256], index: 2, kind: input, shape index: {}]   ;;  %s449_s3 = inlined_call_operand.vmem [shape: f32[8,128], index: 3, kind: input, shape index: {}]   ;;  %s450_s4 = inlined_call_operand.hbm [shape: f32[8,128], index: 4, kind: output, shape index: {0}]   ;;  %s451_s5 = inlined_call_operand.hbm [shape: f32[8,128], index: 5, kind: output, shape index: {1}]   ;;  %s452_s6 = inlined_call_operand.hbm [shape: f32[8,128], index: 6, kind: output, shape index: {2}]  }
   0x1   :  { %13 = vsyncpa [#allocation6], 0 }
   0x2   :  { %14 = vsyncpa [#allocation4], 0 }
   0x3   :  { %15 = vsyncpa [#allocation9], 0  ;;  %s323_s21 = smov [#allocation2]   ;;  %s324_s23 = smov [#allocation5]  }
   0x4   :  { %s22_s22 = sshll.u32 %s323_s21, 4  ;;  %s31_s24 = sshll.u32 %s324_s23, 4  ;;  %s23_s22 = int_to_ptr.vmem [resolvable:$true] %s22_s22  ;;  %s366_s24 = int_to_ptr.vmem [resolvable:$true] %s31_s24 }
   0x5   :  { %s205_s27 = scalar_lea.hbm %s446_s0, 128 }
   0x6   :  { %p206_p0 = scmp.ne.s32.totalorder %s446_s0, %s205_s27  ;;  %p209_p1 = scmp.lt.u32.totalorder %s205_s27, %s446_s0 }
   0x8   :  { %p211_p2 = pnand %p209_p1, %p206_p0 }
   0xa   :  { %214 = shalt.err (!%p211_p2)
}
   0xb   :  { %s215_s8 = scalar_lea.vmem %s23_s22, 128  ;;  %p220_p4 = scmp.lt.s32.totalorder %s23_s22, %s23_s22 }
   0xc   :  { %p216_p3 = scmp.ne.s32.totalorder %s23_s22, %s215_s8  ;;  %p221_p5 = scmp.lt.s32.totalorder %s215_s8, %s215_s8 }
   0xe   :  { %p222_p6 = por %p221_p5, %p220_p4 }
  0x10   :  { %p223_p7 = pnand %p222_p6, %p216_p3 }
  0x12   :  { %226 = shalt.err (!%p223_p7)
}
  0x13   :  { %25 = dma.hbm_to_vmem [thread:$0]  %s446_s0, 128, %s23_s22, [#allocation3]  }
  0x14   :  { %s227_s13 = scalar_lea.hbm %s447_s1, 512 }
  0x15   :  { %p228_p8 = scmp.ne.s32.totalorder %s447_s1, %s227_s13  ;;  %p231_p9 = scmp.lt.u32.totalorder %s227_s13, %s447_s1 }
  0x17   :  { %p233_p10 = pnand %p231_p9, %p228_p8 }
  0x19   :  { %236 = shalt.err (!%p233_p10)
}
  0x1a   :  { %s237_s18 = scalar_lea.vmem %s366_s24, 512  ;;  %p242_p12 = scmp.lt.s32.totalorder %s366_s24, %s366_s24 }
  0x1b   :  { %p238_p11 = scmp.ne.s32.totalorder %s366_s24, %s237_s18  ;;  %p243_p13 = scmp.lt.s32.totalorder %s237_s18, %s237_s18 }
  0x1d   :  { %p244_p0 = por %p243_p13, %p242_p12 }
  0x1f   :  { %p245_p1 = pnand %p244_p0, %p238_p11 }
  0x21   :  { %248 = shalt.err (!%p245_p1)
}
  0x22   :  { %s325_s0 = smov 128   ;;  %s326_s19 = smov 8  }
  0x23   :  { %37 = dma.hbm_to_vmem [thread:$0]  %s447_s1, 512, %s366_s24, [#allocation6], %s325_s0, %s325_s0, %s326_s19  }
  0x24   :  { %315 = dma.done.wait [#allocation3], 128  }
  0x25   :  { %316 = vsyncadd [#allocation3], 4294967168 }
  0x26   :  { %317 = dma.done.wait [#allocation6], 512  }
  0x27   :  { %318 = vsyncadd [#allocation6], 4294966784  ;;  %v327_v0 = vmov 0   ;;  %v197_v1 = vld [vmem:[#allocation5 + $0x4] ss:$8 sps:$4 sm:$0xff]   ;;  %v49_v5 = vld [vmem:[#allocation2] sm:$0xff]  ;;  %v57_v7 = vlaneseq }
  0x28   :  { %123 = vmatprep.mubr.bf16.mxu0 %v327_v0  ;;  %v199_v2 = vld [vmem:[#allocation5] ss:$8 sps:$4 sm:$0xff]   ;;  %91 = vmatprep.subr.bf16.mxu0 %v197_v1  ;;  %v200_v3 = vld [vmem:[#allocation5 + $0x14] ss:$8 sps:$4 sm:$0xff]   ;;  %v202_v4 = vld [vmem:[#allocation5 + $0x10] ss:$8 sps:$4 sm:$0xff]   ;;  %v50_v6 = vpack.c.bf16 %v49_v5, %v49_v5 }
  0x29   :  { %92 = vmatpush1.bf16.msra.mxu0 %v199_v2  ;;  %vm87_vm0 = vcmask 261120   ;;  %v58_v8 = vshrl.u32 %v57_v7, 7  ;;  %v55_v10 = vld [vmem:[%s448_s2] sm:$0x3]  ;;  %s328_s23 = smov [#allocation8]   ;;  %s329_s25 = smov [#allocation10]  }
  0x2a   :  { %93 = vmatprep.subr.bf16.mxu0 %v200_v3  ;;  %s157_s24 = sshll.u32 %s328_s23, 4  ;;  %s167_s26 = sshll.u32 %s329_s25, 4  ;;  %s158_s24 = int_to_ptr.vmem [resolvable:$true] %s157_s24  ;;  %s400_s26 = int_to_ptr.vmem [resolvable:$true] %s167_s26 }
  0x2b   :  { %v59_v9 = vsub.s32 0, %v58_v8  ;;  %v63_v11 = vsub.s32 1, %v58_v8  ;;  %s249_s2 = scalar_lea.vmem %s158_s24, 128  ;;  %p254_p3 = scmp.lt.s32.totalorder %s158_s24, %s158_s24 }
  0x2c   :  { %p250_p2 = scmp.ne.s32.totalorder %s158_s24, %s249_s2  ;;  %p255_p4 = scmp.lt.s32.totalorder %s249_s2, %s249_s2 }
  0x2d   :  { %94 = vmatpush1.bf16.msra.mxu0 %v202_v4  ;;  %v60_v12 = vrot.slane %v55_v10, %v59_v9  ;;  %v64_v13 = vrot.slane %v55_v10, %v63_v11 }
  0x2e   :  { %p256_p5 = por %p255_p4, %p254_p3 }
  0x30   :  { %188 = vmatmul.mubr.msk.bf16.vlgmr.msra.gmra.mrb[0].mxu0 %vm87_vm0, %v50_v6  ;;  %p257_p6 = pnand %p256_p5, %p250_p2 }
 0x103   :  { %v125_v14 = vpop.f32.mrb[0].mxu0 }
 0x104   :  { %v126_v15 = vadd.f32 %v125_v14, %v60_v12  ;;  %v127_v16 = vpop.f32.mrb[1].mxu0 }
 0x105   :  { %v128_v17 = vadd.f32 %v127_v16, %v64_v13  ;;  %v129_v18 = vpop.f32.mrb[2].mxu0 }
 0x106   :  { %139 = vst [vmem:[#allocation8] sm:$0xff] %v126_v15  ;;  %v130_v19 = vpop.f32.mrb[3].mxu0 }
 0x107   :  { %v132_v20 = vmul.f32 0.5, %v128_v17  ;;  %140 = vst [vmem:[#allocation10] sm:$0xff] %v128_v17 }
 0x108   :  { %260 = shalt.err (!%p257_p6)
}
 0x109   :  { %s261_s29 = scalar_lea.hbm %s451_s5, 128 }
 0x10a   :  { %p262_p7 = scmp.ne.s32.totalorder %s451_s5, %s261_s29  ;;  %p265_p8 = scmp.lt.u32.totalorder %s261_s29, %s451_s5 }
 0x10c   :  { %p267_p9 = pnand %p265_p8, %p262_p7 }
 0x10e   :  { %270 = shalt.err (!%p267_p9)
}
 0x10f   :  { %160 = dma.vmem_to_hbm [thread:$0]  %s158_s24, 128, %s451_s5, [#allocation9]  }
 0x110   :  { %s271_s12 = scalar_lea.vmem %s400_s26, 128  ;;  %p276_p11 = scmp.lt.s32.totalorder %s400_s26, %s400_s26 }
 0x111   :  { %p272_p10 = scmp.ne.s32.totalorder %s400_s26, %s271_s12  ;;  %p277_p12 = scmp.lt.s32.totalorder %s271_s12, %s271_s12 }
 0x113   :  { %p278_p13 = por %p277_p12, %p276_p11 }
 0x115   :  { %p279_p0 = pnand %p278_p13, %p272_p10 }
 0x117   :  { %282 = shalt.err (!%p279_p0)
}
 0x118   :  { %s283_s15 = scalar_lea.hbm %s452_s6, 128 }
 0x119   :  { %p284_p1 = scmp.ne.s32.totalorder %s452_s6, %s283_s15  ;;  %p287_p2 = scmp.lt.u32.totalorder %s283_s15, %s452_s6 }
 0x11b   :  { %p289_p3 = pnand %p287_p2, %p284_p1 }
 0x11d   :  { %292 = shalt.err (!%p289_p3)
}
 0x11e   :  { %170 = dma.vmem_to_hbm [thread:$0]  %s400_s26, 128, %s452_s6, [#allocation9]   ;;  %v133_v21 = vmul.f32 1.442695, %v132_v20  ;;  %v135_v22 = vld [vmem:[%s449_s3] sm:$0xff] }
 0x11f   :  { %s330_s1 = smov [#allocation7]  }
 0x120   :  { %203 = vpow2.f32 %v133_v21  ;;  %s147_s22 = sshll.u32 %s330_s1, 4  ;;  %s148_s22 = int_to_ptr.vmem [resolvable:$true] %s147_s22 }
 0x121   :  { %s293_s23 = scalar_lea.vmem %s148_s22, 128  ;;  %p298_p5 = scmp.lt.s32.totalorder %s148_s22, %s148_s22 }
 0x122   :  { %p294_p4 = scmp.ne.s32.totalorder %s148_s22, %s293_s23  ;;  %p299_p6 = scmp.lt.s32.totalorder %s293_s23, %s293_s23 }
 0x124   :  { %p300_p7 = por %p299_p6, %p298_p5 }
 0x126   :  { %p301_p8 = pnand %p300_p7, %p294_p4 }
 0x12a   :  { %v204_v23 = vpop.eup %203 }
 0x12b   :  { %v136_v24 = vmul.f32 %v204_v23, %v135_v22 }
 0x12d   :  { %v137_v25 = vadd.f32 %v136_v24, %v126_v15 }
 0x12f   :  { %138 = vst [vmem:[#allocation7] sm:$0xff] %v137_v25 }
 0x130   :  { %304 = shalt.err (!%p301_p8)
}
 0x131   :  { %s305_s25 = scalar_lea.hbm %s450_s4, 128 }
 0x132   :  { %p306_p9 = scmp.ne.s32.totalorder %s450_s4, %s305_s25  ;;  %p309_p10 = scmp.lt.u32.totalorder %s305_s25, %s450_s4 }
 0x134   :  { %p311_p11 = pnand %p309_p10, %p306_p9 }
 0x136   :  { %314 = shalt.err (!%p311_p11)
}
 0x137   :  { %150 = dma.vmem_to_hbm [thread:$0]  %s148_s22, 128, %s450_s4, [#allocation4]  }
 0x138   :  { %319 = dma.done.wait [#allocation4], 128  }
 0x139   :  { %320 = vsyncadd [#allocation4], 4294967168 }
 0x13a   :  { %321 = dma.done.wait [#allocation9], 256  }
 0x13b   :  { %322 = vsyncadd [#allocation9], 4294967040 }
 0x13c   :  { %180 = vsyncpa [#allocation3], 1 }
 0x13d   :  { %181 = vsyncpa [#allocation6], 1 }
 0x13e   :  { %182 = vsyncpa [#allocation4], 1 }
 0x13f   :  { %183 = vsyncpa [#allocation9], 1 }

// kernel: tpu_custom_call.1
= control target key start
LH: loop header
LB: loop body
LE: loop exit
PB: predicated region body
PF: predicated region fallthrough
CT: control target
= control target key end

     0   :  { %12 = vsyncpa [#allocation3], 0  ;;  %s446_s0 = inlined_call_operand.hbm [shape: f32[8,32], index: 0, kind: input, shape index: {}]   ;;  %s447_s1 = inlined_call_operand.hbm [shape: bf16[32,256], index: 1, kind: input, shape index: {}]   ;;  %s448_s2 = inlined_call_operand.vmem [shape: f32[1,256], index: 2, kind: input, shape index: {}]   ;;  %s449_s3 = inlined_call_operand.vmem [shape: f32[8,128], index: 3, kind: input, shape index: {}]   ;;  %s450_s4 = inlined_call_operand.hbm [shape: f32[8,128], index: 4, kind: output, shape index: {0}]   ;;  %s451_s5 = inlined_call_operand.hbm [shape: f32[8,128], index: 5, kind: output, shape index: {1}]   ;;  %s452_s6 = inlined_call_operand.hbm [shape: f32[8,128], index: 6, kind: output, shape index: {2}]  }
   0x1   :  { %13 = vsyncpa [#allocation6], 0 }
   0x2   :  { %14 = vsyncpa [#allocation4], 0 }
   0x3   :  { %15 = vsyncpa [#allocation9], 0  ;;  %s323_s21 = smov [#allocation2]   ;;  %s324_s23 = smov [#allocation5]  }
   0x4   :  { %s22_s22 = sshll.u32 %s323_s21, 4  ;;  %s31_s24 = sshll.u32 %s324_s23, 4  ;;  %s23_s22 = int_to_ptr.vmem [resolvable:$true] %s22_s22  ;;  %s366_s24 = int_to_ptr.vmem [resolvable:$true] %s31_s24 }
   0x5   :  { %s205_s27 = scalar_lea.hbm %s446_s0, 128 }
   0x6   :  { %p206_p0 = scmp.ne.s32.totalorder %s446_s0, %s205_s27  ;;  %p209_p1 = scmp.lt.u32.totalorder %s205_s27, %s446_s0 }
   0x8   :  { %p211_p2 = pnand %p209_p1, %p206_p0 }
   0xa   :  { %214 = shalt.err (!%p211_p2)
}
   0xb   :  { %s215_s8 = scalar_lea.vmem %s23_s22, 128  ;;  %p220_p4 = scmp.lt.s32.totalorder %s23_s22, %s23_s22 }
   0xc   :  { %p216_p3 = scmp.ne.s32.totalorder %s23_s22, %s215_s8  ;;  %p221_p5 = scmp.lt.s32.totalorder %s215_s8, %s215_s8 }
   0xe   :  { %p222_p6 = por %p221_p5, %p220_p4 }
  0x10   :  { %p223_p7 = pnand %p222_p6, %p216_p3 }
  0x12   :  { %226 = shalt.err (!%p223_p7)
}
  0x13   :  { %25 = dma.hbm_to_vmem [thread:$0]  %s446_s0, 128, %s23_s22, [#allocation3]  }
  0x14   :  { %s227_s13 = scalar_lea.hbm %s447_s1, 512 }
  0x15   :  { %p228_p8 = scmp.ne.s32.totalorder %s447_s1, %s227_s13  ;;  %p231_p9 = scmp.lt.u32.totalorder %s227_s13, %s447_s1 }
  0x17   :  { %p233_p10 = pnand %p231_p9, %p228_p8 }
  0x19   :  { %236 = shalt.err (!%p233_p10)
}
  0x1a   :  { %s237_s18 = scalar_lea.vmem %s366_s24, 512  ;;  %p242_p12 = scmp.lt.s32.totalorder %s366_s24, %s366_s24 }
  0x1b   :  { %p238_p11 = scmp.ne.s32.totalorder %s366_s24, %s237_s18  ;;  %p243_p13 = scmp.lt.s32.totalorder %s237_s18, %s237_s18 }
  0x1d   :  { %p244_p0 = por %p243_p13, %p242_p12 }
  0x1f   :  { %p245_p1 = pnand %p244_p0, %p238_p11 }
  0x21   :  { %248 = shalt.err (!%p245_p1)
}
  0x22   :  { %s325_s0 = smov 128   ;;  %s326_s19 = smov 8  }
  0x23   :  { %37 = dma.hbm_to_vmem [thread:$0]  %s447_s1, 512, %s366_s24, [#allocation6], %s325_s0, %s325_s0, %s326_s19  }
  0x24   :  { %315 = dma.done.wait [#allocation3], 128  }
  0x25   :  { %316 = vsyncadd [#allocation3], 4294967168 }
  0x26   :  { %317 = dma.done.wait [#allocation6], 512  }
  0x27   :  { %318 = vsyncadd [#allocation6], 4294966784  ;;  %v327_v0 = vmov 0   ;;  %v197_v1 = vld [vmem:[#allocation5 + $0x4] ss:$8 sps:$4 sm:$0xff]   ;;  %v49_v5 = vld [vmem:[#allocation2] sm:$0xff]  ;;  %v57_v7 = vlaneseq }
  0x28   :  { %123 = vmatprep.mubr.bf16.mxu0 %v327_v0  ;;  %v199_v2 = vld [vmem:[#allocation5] ss:$8 sps:$4 sm:$0xff]   ;;  %91 = vmatprep.subr.bf16.mxu0 %v197_v1  ;;  %v200_v3 = vld [vmem:[#allocation5 + $0x14] ss:$8 sps:$4 sm:$0xff]   ;;  %v202_v4 = vld [vmem:[#allocation5 + $0x10] ss:$8 sps:$4 sm:$0xff]   ;;  %v50_v6 = vpack.c.bf16 %v49_v5, %v49_v5 }
  0x29   :  { %92 = vmatpush1.bf16.msra.mxu0 %v199_v2  ;;  %vm87_vm0 = vcmask 261120   ;;  %v58_v8 = vshrl.u32 %v57_v7, 7  ;;  %v55_v10 = vld [vmem:[%s448_s2] sm:$0x3]  ;;  %s328_s23 = smov [#allocation8]   ;;  %s329_s25 = smov [#allocation10]  }
  0x2a   :  { %93 = vmatprep.subr.bf16.mxu0 %v200_v3  ;;  %s157_s24 = sshll.u32 %s328_s23, 4  ;;  %s167_s26 = sshll.u32 %s329_s25, 4  ;;  %s158_s24 = int_to_ptr.vmem [resolvable:$true] %s157_s24  ;;  %s400_s26 = int_to_ptr.vmem [resolvable:$true] %s167_s26 }
  0x2b   :  { %v59_v9 = vsub.s32 0, %v58_v8  ;;  %v63_v11 = vsub.s32 1, %v58_v8  ;;  %s249_s2 = scalar_lea.vmem %s158_s24, 128  ;;  %p254_p3 = scmp.lt.s32.totalorder %s158_s24, %s158_s24 }
  0x2c   :  { %p250_p2 = scmp.ne.s32.totalorder %s158_s24, %s249_s2  ;;  %p255_p4 = scmp.lt.s32.totalorder %s249_s2, %s249_s2 }
  0x2d   :  { %94 = vmatpush1.bf16.msra.mxu0 %v202_v4  ;;  %v60_v12 = vrot.slane %v55_v10, %v59_v9  ;;  %v64_v13 = vrot.slane %v55_v10, %v63_v11 }
  0x2e   :  { %p256_p5 = por %p255_p4, %p254_p3 }
  0x30   :  { %188 = vmatmul.mubr.msk.bf16.vlgmr.msra.gmra.mrb[0].mxu0 %vm87_vm0, %v50_v6  ;;  %p257_p6 = pnand %p256_p5, %p250_p2 }
 0x103   :  { %v125_v14 = vpop.f32.mrb[0].mxu0 }
 0x104   :  { %v126_v15 = vadd.f32 %v125_v14, %v60_v12  ;;  %v127_v16 = vpop.f32.mrb[1].mxu0 }
 0x105   :  { %v128_v17 = vadd.f32 %v127_v16, %v64_v13  ;;  %v129_v18 = vpop.f32.mrb[2].mxu0 }
 0x106   :  { %139 = vst [vmem:[#allocation8] sm:$0xff] %v126_v15  ;;  %v130_v19 = vpop.f32.mrb[3].mxu0 }
 0x107   :  { %v132_v20 = vmul.f32 0.5, %v128_v17  ;;  %140 = vst [vmem:[#allocation10] sm:$0xff] %v128_v17 }
 0x108   :  { %260 = shalt.err (!%p257_p6)
}
 0x109   :  { %s261_s29 = scalar_lea.hbm %s451_s5, 128 }
 0x10a   :  { %p262_p7 = scmp.ne.s32.totalorder %s451_s5, %s261_s29  ;;  %p265_p8 = scmp.lt.u32.totalorder %s261_s29, %s451_s5 }
 0x10c   :  { %p267_p9 = pnand %p265_p8, %p262_p7 }
 0x10e   :  { %270 = shalt.err (!%p267_p9)
}
 0x10f   :  { %160 = dma.vmem_to_hbm [thread:$0]  %s158_s24, 128, %s451_s5, [#allocation9]  }
 0x110   :  { %s271_s12 = scalar_lea.vmem %s400_s26, 128  ;;  %p276_p11 = scmp.lt.s32.totalorder %s400_s26, %s400_s26 }
 0x111   :  { %p272_p10 = scmp.ne.s32.totalorder %s400_s26, %s271_s12  ;;  %p277_p12 = scmp.lt.s32.totalorder %s271_s12, %s271_s12 }
 0x113   :  { %p278_p13 = por %p277_p12, %p276_p11 }
 0x115   :  { %p279_p0 = pnand %p278_p13, %p272_p10 }
 0x117   :  { %282 = shalt.err (!%p279_p0)
}
 0x118   :  { %s283_s15 = scalar_lea.hbm %s452_s6, 128 }
 0x119   :  { %p284_p1 = scmp.ne.s32.totalorder %s452_s6, %s283_s15  ;;  %p287_p2 = scmp.lt.u32.totalorder %s283_s15, %s452_s6 }
 0x11b   :  { %p289_p3 = pnand %p287_p2, %p284_p1 }
 0x11d   :  { %292 = shalt.err (!%p289_p3)
}
 0x11e   :  { %170 = dma.vmem_to_hbm [thread:$0]  %s400_s26, 128, %s452_s6, [#allocation9]   ;;  %v133_v21 = vmul.f32 1.442695, %v132_v20  ;;  %v135_v22 = vld [vmem:[%s449_s3] sm:$0xff] }
 0x11f   :  { %s330_s1 = smov [#allocation7]  }
 0x120   :  { %203 = vpow2.f32 %v133_v21  ;;  %s147_s22 = sshll.u32 %s330_s1, 4  ;;  %s148_s22 = int_to_ptr.vmem [resolvable:$true] %s147_s22 }
 0x121   :  { %s293_s23 = scalar_lea.vmem %s148_s22, 128  ;;  %p298_p5 = scmp.lt.s32.totalorder %s148_s22, %s148_s22 }
 0x122   :  { %p294_p4 = scmp.ne.s32.totalorder %s148_s22, %s293_s23  ;;  %p299_p6 = scmp.lt.s32.totalorder %s293_s23, %s293_s23 }
 0x124   :  { %p300_p7 = por %p299_p6, %p298_p5 }
 0x126   :  { %p301_p8 = pnand %p300_p7, %p294_p4 }
 0x12a   :  { %v204_v23 = vpop.eup %203 }
 0x12b   :  { %v136_v24 = vmul.f32 %v204_v23, %v135_v22 }
 0x12d   :  { %v137_v25 = vadd.f32 %v136_v24, %v126_v15 }
 0x12f   :  { %138 = vst [vmem:[#allocation7] sm:$0xff] %v137_v25 }
 0x130   :  { %304 = shalt.err (!%p301_p8)
}
 0x131   :  { %s305_s25 = scalar_lea.hbm %s450_s4, 128 }
 0x132   :  { %p306_p9 = scmp.ne.s32.totalorder %s450_s4, %s305_s25  ;;  %p309_p10 = scmp.lt.u32.totalorder %s305_s25, %s450_s4 }
 0x134   :  { %p311_p11 = pnand %p309_p10, %p306_p9 }
 0x136   :  { %314 = shalt.err (!%p311_p11)
}
 0x137   :  { %150 = dma.vmem_to_hbm [thread:$0]  %s148_s22, 128, %s450_s4, [#allocation4]  }
 0x138   :  { %319 = dma.done.wait [#allocation4], 128  }
 0x139   :  { %320 = vsyncadd [#allocation4], 4294967168 }
 0x13a   :  { %321 = dma.done.wait [#allocation9], 256  }
 0x13b   :  { %322 = vsyncadd [#allocation9], 4294967040 }
 0x13c   :  { %180 = vsyncpa [#allocation3], 1 }
 0x13d   :  { %181 = vsyncpa [#allocation6], 1 }
 0x13e   :  { %182 = vsyncpa [#allocation4], 1 }
 0x13f   :  { %183 = vsyncpa [#allocation9], 1 }

</bundles_post_ra>
